<compile_context>
chip_gen: v5e
topology: v5e:2x2
jax: 0.10.0
libtpu: 0.0.40
codegen_flags: <defaults>
</compile_context>

<pallas_src>
import functools

import jax
import jax.numpy as jnp
from jax.experimental import pallas as pl
from jax.experimental.pallas import tpu as pltpu

BN_EPS = 1e-5
LANE = 128


def _round_up(x, m):
    return (x + m - 1) // m * m


def _classifier_safn_kernel(x_ref, w1_ref, b1_ref, w2_ref, b2_ref,
                            feat_ref, logits_ref):
    # First linear (BN folded into w1/b1) + ReLU.
    f = jnp.dot(x_ref[...], w1_ref[...], preferred_element_type=jnp.float32)
    f = jnp.maximum(f + b1_ref[...], 0.0)
    feat_ref[...] = f.astype(feat_ref.dtype)

    # Final fc: logits.
    y = jnp.dot(f.astype(w2_ref.dtype), w2_ref[...],
                preferred_element_type=jnp.float32)
    logits_ref[...] = (y + b2_ref[...]).astype(logits_ref.dtype)


@functools.partial(jax.jit, static_argnames=())
def classifier_safn_forward(x, params):
    """x: (B, feature_dim). Returns (bottleneck_features, logits)."""
    B, F = x.shape
    D = params["w1"].shape[1]
    C = params["w2"].shape[1]

    # ---- Fold eval-mode BatchNorm into the first linear. ----
    scale = params["gamma"] * jax.lax.rsqrt(params["var"] + BN_EPS)   # (1, D)
    shift = params["beta"] - params["mean"] * scale                   # (1, D)
    w1 = params["w1"] * scale                                          # (F, D)
    b1 = params["b1"] * scale + shift                                  # (1, D)
    w2 = params["w2"]
    b2 = params["b2"]

    # ---- Pad to lane-dense multiples of 128 (zero padding is exact). ----
    Fp = _round_up(F, LANE)
    Dp = _round_up(D, LANE)
    Cp = _round_up(C, LANE)

    # Batch tile: full-MXU rows for large batch, 8-sublane aligned otherwise.
    if B >= 256:
        TB = 256
    elif B >= 128:
        TB = 128
    else:
        TB = _round_up(B, 8)
    Bp = _round_up(B, TB)
    n_tiles = Bp // TB

    xp = jnp.zeros((Bp, Fp), x.dtype).at[:B, :F].set(x)
    w1p = jnp.zeros((Fp, Dp), w1.dtype).at[:F, :D].set(w1)
    b1p = jnp.zeros((1, Dp), b1.dtype).at[:, :D].set(b1)
    w2p = jnp.zeros((Dp, Cp), w2.dtype).at[:D, :C].set(w2)
    b2p = jnp.zeros((1, Cp), b2.dtype).at[:, :C].set(b2)

    # VMEM budget: resident weights + double-buffered activation tiles,
    # 2x headroom, capped below the 64 MiB physical VMEM of a v7x TC.
    itemsize = 4
    weight_bytes = (Fp * Dp + Dp * Cp + Dp + Cp) * itemsize
    tile_bytes = 2 * TB * (Fp + Dp + Cp) * itemsize
    vmem_limit = int(min(max(2 * (weight_bytes + tile_bytes), 4 << 20), 48 << 20))

    feat_p, logits_p = pl.pallas_call(
        _classifier_safn_kernel,
        out_shape=(
            jax.ShapeDtypeStruct((Bp, Dp), jnp.float32),
            jax.ShapeDtypeStruct((Bp, Cp), jnp.float32),
        ),
        grid=(n_tiles,),
        in_specs=[
            pl.BlockSpec((TB, Fp), lambda i: (i, 0)),   # x tile (pipelined)
            pl.BlockSpec((Fp, Dp), lambda i: (0, 0)),   # W1 (BN folded), resident
            pl.BlockSpec((1, Dp), lambda i: (0, 0)),    # b1 (BN folded), resident
            pl.BlockSpec((Dp, Cp), lambda i: (0, 0)),   # W2, resident
            pl.BlockSpec((1, Cp), lambda i: (0, 0)),    # b2, resident
        ],
        out_specs=(
            pl.BlockSpec((TB, Dp), lambda i: (i, 0)),
            pl.BlockSpec((TB, Cp), lambda i: (i, 0)),
        ),
        compiler_params=pltpu.CompilerParams(
            dimension_semantics=("parallel",),
            vmem_limit_bytes=vmem_limit,
        ),
    )(xp, w1p, b1p, w2p, b2p)

    return feat_p[:B, :D], logits_p[:B, :C]


def init_params(key, feature_dim, bottleneck_dim, class_num):
    """Deterministic init mirroring ClassifierSAFN.__init__ (num_blocks=1)."""
    k1, k2, k3, k4, k5 = jax.random.split(key, 5)
    return {
        # Block.fc : Linear(feature_dim, bottleneck_dim), weight/bias ~ N(0, 0.01)
        "w1": 0.01 * jax.random.normal(k1, (feature_dim, bottleneck_dim), jnp.float32),
        "b1": 0.01 * jax.random.normal(k2, (1, bottleneck_dim), jnp.float32),
        # Block.bn : BatchNorm1d, weight ~ N(1, 0.01), bias = 0, running stats (0, 1)
        "gamma": 1.0 + 0.01 * jax.random.normal(k3, (1, bottleneck_dim), jnp.float32),
        "beta": jnp.zeros((1, bottleneck_dim), jnp.float32),
        "mean": jnp.zeros((1, bottleneck_dim), jnp.float32),
        "var": jnp.ones((1, bottleneck_dim), jnp.float32),
        # fc : Linear(bottleneck_dim, class_num), weight/bias ~ N(0, 0.01)
        "w2": 0.01 * jax.random.normal(k4, (bottleneck_dim, class_num), jnp.float32),
        "b2": 0.01 * jax.random.normal(k5, (1, class_num), jnp.float32),
    }


def reference_forward(x, p):
    f = x @ p["w1"] + p["b1"]
    f = p["gamma"] * (f - p["mean"]) / jnp.sqrt(p["var"] + BN_EPS) + p["beta"]
    f = jnp.maximum(f, 0.0)
    y = f @ p["w2"] + p["b2"]
    return f, y


if __name__ == "__main__":
    B, feature_dim, bottleneck_dim, class_num = 8, 32, 128, 16

    key = jax.random.PRNGKey(0)
    kx, kp = jax.random.split(key)
    x = jax.random.normal(kx, (B, feature_dim), jnp.float32)
    params = init_params(kp, feature_dim, bottleneck_dim, class_num)

    feat, logits = classifier_safn_forward(x, params)
    jax.block_until_ready((feat, logits))

    f_ref, y_ref = reference_forward(x, params)
    assert feat.shape == (B, bottleneck_dim) and logits.shape == (B, class_num)
    assert jnp.allclose(feat, f_ref, atol=1e-5, rtol=1e-5)
    assert jnp.allclose(logits, y_ref, atol=1e-5, rtol=1e-5)

    print("KERNEL_OK")
</pallas_src>

<mosaic_0001>
module attributes {stable_mosaic.version = 11 : i64} {
  func.func @_classifier_safn_kernel(%arg0: i32, %arg1: memref<8x128xf32, #tpu.memory_space<vmem>>, %arg2: memref<128x128xf32, #tpu.memory_space<vmem>>, %arg3: memref<1x128xf32, #tpu.memory_space<vmem>>, %arg4: memref<128x128xf32, #tpu.memory_space<vmem>>, %arg5: memref<1x128xf32, #tpu.memory_space<vmem>>, %arg6: memref<8x128xf32, #tpu.memory_space<vmem>>, %arg7: memref<8x128xf32, #tpu.memory_space<vmem>>) attributes {dimension_semantics = [#tpu.dimension_semantics<parallel>], iteration_bounds = array<i64: 1>, scalar_prefetch = 0 : i64, scratch_operands = 0 : i64, tpu.core_type = #tpu.core_type<tc>, window_params = [{transform_indices = @transform_0, window_bounds = array<i64: 8, 128>}, {pipeline_mode = #tpu.pipeline_mode<synchronous>, transform_indices = @transform_1, window_bounds = array<i64: 128, 128>}, {pipeline_mode = #tpu.pipeline_mode<synchronous>, transform_indices = @transform_2, window_bounds = array<i64: 1, 128>}, {pipeline_mode = #tpu.pipeline_mode<synchronous>, transform_indices = @transform_3, window_bounds = array<i64: 128, 128>}, {pipeline_mode = #tpu.pipeline_mode<synchronous>, transform_indices = @transform_4, window_bounds = array<i64: 1, 128>}, {transform_indices = @transform_5, window_bounds = array<i64: 8, 128>}, {transform_indices = @transform_6, window_bounds = array<i64: 8, 128>}]} {
    %c0 = arith.constant 0 : index
    %c0_0 = arith.constant 0 : index
    %0 = vector.load %arg1[%c0, %c0_0] : memref<8x128xf32, #tpu.memory_space<vmem>>, vector<8x128xf32>
    %c0_1 = arith.constant 0 : index
    %c0_2 = arith.constant 0 : index
    %1 = vector.load %arg2[%c0_1, %c0_2] : memref<128x128xf32, #tpu.memory_space<vmem>>, vector<128x128xf32>
    %cst = arith.constant dense<0.000000e+00> : vector<8x128xf32>
    %2 = tpu.matmul %0, %1, %cst {dimension_numbers = #tpu.dot_dimension_numbers<[1], [0], [0], [1], [0, 0, 1, 1], [], []>} : vector<8x128xf32>, vector<128x128xf32>, vector<8x128xf32> -> vector<8x128xf32>
    %c0_3 = arith.constant 0 : index
    %c0_4 = arith.constant 0 : index
    %3 = vector.load %arg3[%c0_3, %c0_4] : memref<1x128xf32, #tpu.memory_space<vmem>>, vector<1x128xf32>
    %4 = vector.broadcast %3 : vector<1x128xf32> to vector<8x128xf32>
    %5 = arith.addf %2, %4 : vector<8x128xf32>
    %cst_5 = arith.constant 0.000000e+00 : f32
    %6 = vector.broadcast %cst_5 : f32 to vector<8x128xf32>
    %7 = arith.maximumf %5, %6 : vector<8x128xf32>
    %c0_6 = arith.constant 0 : index
    %c0_7 = arith.constant 0 : index
    %8 = vector.load %arg6[%c0_6, %c0_7] : memref<8x128xf32, #tpu.memory_space<vmem>>, vector<8x128xf32>
    tpu.vector_store %arg6[%c0_6, %c0_7], %7 {strides = array<i32>} : memref<8x128xf32, #tpu.memory_space<vmem>>, vector<8x128xf32>,
    %c0_8 = arith.constant 0 : index
    %c0_9 = arith.constant 0 : index
    %9 = vector.load %arg4[%c0_8, %c0_9] : memref<128x128xf32, #tpu.memory_space<vmem>>, vector<128x128xf32>
    %cst_10 = arith.constant dense<0.000000e+00> : vector<8x128xf32>
    %10 = tpu.matmul %7, %9, %cst_10 {dimension_numbers = #tpu.dot_dimension_numbers<[1], [0], [0], [1], [0, 0, 1, 1], [], []>} : vector<8x128xf32>, vector<128x128xf32>, vector<8x128xf32> -> vector<8x128xf32>
    %c0_11 = arith.constant 0 : index
    %c0_12 = arith.constant 0 : index
    %11 = vector.load %arg5[%c0_11, %c0_12] : memref<1x128xf32, #tpu.memory_space<vmem>>, vector<1x128xf32>
    %12 = vector.broadcast %11 : vector<1x128xf32> to vector<8x128xf32>
    %13 = arith.addf %10, %12 : vector<8x128xf32>
    %c0_13 = arith.constant 0 : index
    %c0_14 = arith.constant 0 : index
    %14 = vector.load %arg7[%c0_13, %c0_14] : memref<8x128xf32, #tpu.memory_space<vmem>>, vector<8x128xf32>
    tpu.vector_store %arg7[%c0_13, %c0_14], %13 {strides = array<i32>} : memref<8x128xf32, #tpu.memory_space<vmem>>, vector<8x128xf32>,
    return
  }
  func.func @transform_0(%arg0: i32) -> (i32, i32) {
    %c0_i32 = arith.constant 0 : i32
    %c0_i32_0 = arith.constant 0 : i32
    return %arg0, %c0_i32 : i32, i32
  }
  func.func @transform_1(%arg0: i32) -> (i32, i32) {
    %c0_i32 = arith.constant 0 : i32
    %c0_i32_0 = arith.constant 0 : i32
    %c0_i32_1 = arith.constant 0 : i32
    return %c0_i32, %c0_i32_0 : i32, i32
  }
  func.func @transform_2(%arg0: i32) -> (i32, i32) {
    %c0_i32 = arith.constant 0 : i32
    %c0_i32_0 = arith.constant 0 : i32
    %c0_i32_1 = arith.constant 0 : i32
    return %c0_i32, %c0_i32_0 : i32, i32
  }
  func.func @transform_3(%arg0: i32) -> (i32, i32) {
    %c0_i32 = arith.constant 0 : i32
    %c0_i32_0 = arith.constant 0 : i32
    %c0_i32_1 = arith.constant 0 : i32
    return %c0_i32, %c0_i32_0 : i32, i32
  }
  func.func @transform_4(%arg0: i32) -> (i32, i32) {
    %c0_i32 = arith.constant 0 : i32
    %c0_i32_0 = arith.constant 0 : i32
    %c0_i32_1 = arith.constant 0 : i32
    return %c0_i32, %c0_i32_0 : i32, i32
  }
  func.func @transform_5(%arg0: i32) -> (i32, i32) {
    %c0_i32 = arith.constant 0 : i32
    %c0_i32_0 = arith.constant 0 : i32
    return %arg0, %c0_i32 : i32, i32
  }
  func.func @transform_6(%arg0: i32) -> (i32, i32) {
    %c0_i32 = arith.constant 0 : i32
    %c0_i32_0 = arith.constant 0 : i32
    return %arg0, %c0_i32 : i32, i32
  }
}

</mosaic_0001>

<bundles_post_ra>
// kernel: classifier_safn_forward.1
= control target key start
LH: loop header
LB: loop body
LE: loop exit
PB: predicated region body
PF: predicated region fallthrough
CT: control target
= control target key end

     0   :  { %12 = vsyncpa [#allocation3], 0  ;;  %s344_s0 = inlined_call_operand.vmem [shape: f32[8,128], index: 0, kind: input, shape index: {}]   ;;  %s345_s1 = inlined_call_operand.vmem [shape: f32[128,128], index: 1, kind: input, shape index: {}]   ;;  %s346_s2 = inlined_call_operand.vmem [shape: f32[1,128], index: 2, kind: input, shape index: {}]   ;;  %s347_s3 = inlined_call_operand.vmem [shape: f32[128,128], index: 3, kind: input, shape index: {}]   ;;  %s348_s4 = inlined_call_operand.vmem [shape: f32[1,128], index: 4, kind: input, shape index: {}]   ;;  %s349_s5 = inlined_call_operand.hbm [shape: f32[8,128], index: 5, kind: output, shape index: {0}]   ;;  %s350_s6 = inlined_call_operand.hbm [shape: f32[8,128], index: 6, kind: output, shape index: {1}]  }
   0x1   :  { %v40_v0 = vld [vmem:[%s345_s1 + $0x78] sm:$0xff]  ;;  %v39_v1 = vld [vmem:[%s345_s1 + $0x70] sm:$0xff]  ;;  %v38_v2 = vld [vmem:[%s345_s1 + $0x68] sm:$0xff] }
   0x2   :  { %45 = vmatpush.msra.mxu0 %v40_v0  ;;  %v37_v3 = vld [vmem:[%s345_s1 + $0x60] sm:$0xff]  ;;  %v82_v4 = vld [vmem:[%s347_s3 + $0x78] sm:$0xff]  ;;  %v81_v6 = vld [vmem:[%s347_s3 + $0x70] sm:$0xff] }
   0x3   :  { %v36_v5 = vld [vmem:[%s345_s1 + $0x58] sm:$0xff]  ;;  %87 = vmatpush.msra.mxu1 %v82_v4  ;;  %v80_v7 = vld [vmem:[%s347_s3 + $0x68] sm:$0xff]  ;;  %v35_v8 = vld [vmem:[%s345_s1 + $0x50] sm:$0xff] }
   0x4   :  { %46 = vmatpush.msra.mxu0 %v39_v1  ;;  %v79_v9 = vld [vmem:[%s347_s3 + $0x60] sm:$0xff]  ;;  %v34_v10 = vld [vmem:[%s345_s1 + $0x48] sm:$0xff]  ;;  %v78_v11 = vld [vmem:[%s347_s3 + $0x58] sm:$0xff] }
   0x5   :  { %88 = vmatpush.msra.mxu1 %v81_v6 }
   0x6   :  { %47 = vmatpush.msra.mxu0 %v38_v2 }
   0x7   :  { %89 = vmatpush.msra.mxu1 %v80_v7 }
   0x8   :  { %48 = vmatpush.msra.mxu0 %v37_v3 }
   0xa   :  { %49 = vmatpush.msra.mxu0 %v36_v5 }
   0xc   :  { %50 = vmatpush.msra.mxu0 %v35_v8 }
   0xd   :  { %13 = vsyncpa [#allocation5], 0  ;;  %v33_v12 = vld [vmem:[%s345_s1 + $0x40] sm:$0xff]  ;;  %90 = vmatpush.msra.mxu1 %v79_v9  ;;  %v77_v13 = vld [vmem:[%s347_s3 + $0x50] sm:$0xff]  ;;  %s196_s15 = smov [#allocation2]   ;;  %s115_s19 = sshll.u32 %s349_s5, 4  ;;  %s116_s19 = int_to_ptr.hbm [resolvable:$true] %s115_s19 }
   0xe   :  { %51 = vmatpush.msra.mxu0 %v34_v10  ;;  %v32_v14 = vld [vmem:[%s345_s1 + $0x38] sm:$0xff]  ;;  %v76_v15 = vld [vmem:[%s347_s3 + $0x48] sm:$0xff]  ;;  %v31_v16 = vld [vmem:[%s345_s1 + $0x30] sm:$0xff]  ;;  %s113_s16 = sshll.u32 %s196_s15, 4  ;;  %s197_s21 = smov [#allocation4]   ;;  %s114_s16 = int_to_ptr.vmem [resolvable:$true] %s113_s16 }
   0xf   :  { %91 = vmatpush.msra.mxu1 %v78_v11  ;;  %v75_v17 = vld [vmem:[%s347_s3 + $0x40] sm:$0xff]  ;;  %v30_v18 = vld [vmem:[%s345_s1 + $0x28] sm:$0xff]  ;;  %v74_v19 = vld [vmem:[%s347_s3 + $0x38] sm:$0xff]  ;;  %s126_s24 = sshll.u32 %s350_s6, 4  ;;  %s127_s24 = int_to_ptr.hbm [resolvable:$true] %s126_s24 }
  0x10   :  { %52 = vmatpush.msra.mxu0 %v33_v12  ;;  %v29_v20 = vld [vmem:[%s345_s1 + $0x20] sm:$0xff]  ;;  %v73_v21 = vld [vmem:[%s347_s3 + $0x30] sm:$0xff]  ;;  %v28_v22 = vld [vmem:[%s345_s1 + $0x18] sm:$0xff] }
  0x11   :  { %92 = vmatpush.msra.mxu1 %v77_v13  ;;  %v72_v23 = vld [vmem:[%s347_s3 + $0x28] sm:$0xff]  ;;  %v27_v24 = vld [vmem:[%s345_s1 + $0x10] sm:$0xff]  ;;  %v71_v25 = vld [vmem:[%s347_s3 + $0x20] sm:$0xff] }
  0x12   :  { %53 = vmatpush.msra.mxu0 %v32_v14  ;;  %v26_v26 = vld [vmem:[%s345_s1 + $0x8] sm:$0xff]  ;;  %v70_v27 = vld [vmem:[%s347_s3 + $0x18] sm:$0xff]  ;;  %v25_v28 = vld [vmem:[%s345_s1] sm:$0xff] }
  0x13   :  { %93 = vmatpush.msra.mxu1 %v76_v15  ;;  %v24_v29 = vld [vmem:[%s344_s0] sm:$0xff]  ;;  %v69_v30 = vld [vmem:[%s347_s3 + $0x10] sm:$0xff]  ;;  %v68_v31 = vld [vmem:[%s347_s3 + $0x8] sm:$0xff] }
  0x14   :  { %54 = vmatpush.msra.mxu0 %v31_v16  ;;  %v67_v32 = vld [vmem:[%s347_s3] sm:$0xff] }
  0x15   :  { %94 = vmatpush.msra.mxu1 %v75_v17  ;;  %v142_v33 = vld [vmem:[%s346_s2] ss:$0 sm:$0xff]  ;;  %s124_s2 = sshll.u32 %s197_s21, 4  ;;  %s125_s2 = int_to_ptr.vmem [resolvable:$true] %s124_s2 }
  0x16   :  { %55 = vmatpush.msra.mxu0 %v30_v18  ;;  %v143_v37 = vld [vmem:[%s348_s4] ss:$0 sm:$0xff] }
  0x17   :  { %95 = vmatpush.msra.mxu1 %v74_v19 }
  0x18   :  { %56 = vmatpush.msra.mxu0 %v29_v20 }
  0x19   :  { %96 = vmatpush.msra.mxu1 %v73_v21 }
  0x1a   :  { %57 = vmatpush.msra.mxu0 %v28_v22 }
  0x1b   :  { %97 = vmatpush.msra.mxu1 %v72_v23 }
  0x1c   :  { %58 = vmatpush.msra.mxu0 %v27_v24 }
  0x1d   :  { %98 = vmatpush.msra.mxu1 %v71_v25 }
  0x1e   :  { %59 = vmatpush.msra.mxu0 %v26_v26 }
  0x1f   :  { %99 = vmatpush.msra.mxu1 %v70_v27 }
  0x20   :  { %60 = vmatpush.msra.mxu0 %v25_v28 }
  0x21   :  { %61 = vmatmul.f32.vlgmr.msra.gmra.mxu0 %v24_v29  ;;  %100 = vmatpush.msra.mxu1 %v69_v30 }
  0x23   :  { %101 = vmatpush.msra.mxu1 %v68_v31 }
  0x25   :  { %102 = vmatpush.msra.mxu1 %v67_v32 }
  0x9e   :  { %v62_v34 = vpop.f32.mrf.mxu0 }
  0x9f   :  { %v63_v35 = vadd.f32 %v142_v33, %v62_v34 }
  0xa1   :  { %v65_v36 = vmax.f32 %v63_v35, 0.0 }
  0xa3   :  { %66 = vst [vmem:[#allocation2] sm:$0xff] %v65_v36  ;;  %103 = vmatmul.f32.vlgmr.msra.gmra.mxu1 %v65_v36 }
  0xa4   :  { %118 = dma.vmem_to_hbm [thread:$0]  %s114_s16, 128, %s116_s19, [#allocation3]  }
 0x120   :  { %v104_v38 = vpop.f32.mrf.mxu1 }
 0x121   :  { %v105_v39 = vadd.f32 %v143_v37, %v104_v38 }
 0x123   :  { %107 = vst [vmem:[#allocation4] sm:$0xff] %v105_v39 }
 0x124   :  { %129 = dma.vmem_to_hbm [thread:$0]  %s125_s2, 128, %s127_s24, [#allocation5]  }
 0x125   :  { %192 = dma.done.wait [#allocation3], 128  }
 0x126   :  { %193 = vsyncadd [#allocation3], 4294967168 }
 0x127   :  { %194 = dma.done.wait [#allocation5], 128  }
 0x128   :  { %195 = vsyncadd [#allocation5], 4294967168 }
 0x129   :  { %138 = vsyncpa [#allocation3], 1 }
 0x12a   :  { %139 = vsyncpa [#allocation5], 1 }

</bundles_post_ra>
